<compile_context>
chip_gen: v7x
topology: tpu7x:2x2x1
jax: 0.10.0
libtpu: 0.0.40
codegen_flags: <defaults>
</compile_context>

<pallas_src>
import jax
import jax.numpy as jnp
import numpy as np
from jax.experimental import pallas as pl
from jax.experimental.pallas import tpu as pltpu


def _round_up(x, m):
    return (x + m - 1) // m * m


# ----------------------------------------------------------------------------
# Pallas kernel: fused 5-layer block-structured MLP (bf16 weights, f32 accum).
#   h   = relu(z @ W0 + b0);  h = relu(h @ Wk + bk), k = 1..3
#   rep = h @ W4 + b4                       (raw net_out slab: [gamma-1 | beta])
#   gam = rep + gamma_mask                  (FiLM "+1" folded into the kernel)
# ----------------------------------------------------------------------------
def _film_fused_kernel(z_ref, w0, w1, w2, w3, w4, b_ref, rep_ref, gamma_ref):
    H = w1.shape[0]
    rep_pad = rep_ref.shape[1]

    h = z_ref[...].astype(jnp.bfloat16)
    for k, w in enumerate((w0, w1, w2, w3)):
        s = jnp.dot(h, w[...], preferred_element_type=jnp.float32)
        s = s + b_ref[k:k + 1, 0:H]                      # f32 bias add
        h = jnp.maximum(s, 0.0).astype(jnp.bfloat16)

    out = jnp.dot(h, w4[...], preferred_element_type=jnp.float32)
    out = out + b_ref[4:5, 0:rep_pad]                    # output bias (f32)
    rep_ref[...] = out.astype(rep_ref.dtype)
    gamma_ref[...] = (out + b_ref[5:6, 0:rep_pad]).astype(gamma_ref.dtype)


def run_film_fused(z, fused_ws, bias_pack, rep_pad, tb_max=512):
    """z: [B, L] f32. Returns (rep_slab, gamma_slab), each [B, rep_pad] f32.

    rep_slab columns [off_n : off_n + 2*C_n] hold net n's [gamma-1 | beta];
    gamma_slab == rep_slab + gamma_mask (the FiLM +1 on gamma lanes).
    """
    B, L = z.shape
    # Pad batch to a 16-row multiple (full bf16 vregs, unmasked stores).
    B_pad = _round_up(max(B, 16), 16)
    if B_pad <= tb_max:
        TB = B_pad
    else:
        TB = tb_max
        B_pad = _round_up(B_pad, TB)
    if B_pad != B:
        z = jnp.pad(z, ((0, B_pad - B), (0, 0)))
    grid = (B_pad // TB,)

    w0, w1, w2, w3, w4 = fused_ws
    H = w1.shape[0]
    BW = bias_pack.shape[1]

    batch_map = lambda i: (i, 0)
    const_map = lambda i: (0, 0)   # weights/bias DMA'd once, VMEM-resident

    in_specs = [
        pl.BlockSpec((TB, L), batch_map),
        pl.BlockSpec((L, H), const_map),
        pl.BlockSpec((H, H), const_map),
        pl.BlockSpec((H, H), const_map),
        pl.BlockSpec((H, H), const_map),
        pl.BlockSpec((H, rep_pad), const_map),
        pl.BlockSpec((8, BW), const_map),
    ]
    out_specs = [
        pl.BlockSpec((TB, rep_pad), batch_map),
        pl.BlockSpec((TB, rep_pad), batch_map),
    ]
    out_shape = [
        jax.ShapeDtypeStruct((B_pad, rep_pad), jnp.float32),
        jax.ShapeDtypeStruct((B_pad, rep_pad), jnp.float32),
    ]

    rep, gam = pl.pallas_call(
        _film_fused_kernel,
        grid=grid,
        in_specs=in_specs,
        out_specs=out_specs,
        out_shape=out_shape,
        compiler_params=pltpu.CompilerParams(
            dimension_semantics=("parallel",),      # shards batch tiles on v7x's 2 TCs
            vmem_limit_bytes=32 * 1024 * 1024,
        ),
    )(z, w0, w1, w2, w3, w4, bias_pack)
    return rep[:B], gam[:B]


# ----------------------------------------------------------------------------
# FILMNetwork in JAX, all hypernetworks fused into one Pallas kernel call
# ----------------------------------------------------------------------------
class FILMNetworkPallas:
    def __init__(self, hypo_param_shapes, latent_dim, num_hidden=3, seed=0):
        assert num_hidden == 3, "kernel is specialized to num_hidden=3 (5 linears)"
        self.names = [n for n, _ in hypo_param_shapes]
        self.param_shapes = [tuple(s) for _, s in hypo_param_shapes]
        self.latent_dim = latent_dim
        self.num_hidden = num_hidden

        L = latent_dim
        N = len(self.param_shapes)
        self.out_dims = [2 * int(s[0]) for s in self.param_shapes]
        self.offsets = list(np.concatenate([[0], np.cumsum(self.out_dims)[:-1]]).astype(int))
        self.representation_dim = int(sum(self.out_dims))
        self.rep_pad = max(128, _round_up(self.representation_dim, 128))
        H = N * L                                  # fused hidden width (kept at N*L)
        self.H = H
        BW = max(_round_up(H, 128), self.rep_pad)  # lane width of the bias pack

        # --- per-net f32 weight init (also used by the references) -----------
        key = jax.random.PRNGKey(seed)
        self.nets = []  # list of (weights [in,out] x5, biases [1,out] x5), f32
        for shape in self.param_shapes:
            out_features = 2 * int(shape[0])
            dims = [L] + [L] * (num_hidden + 1) + [out_features]
            ws, bs = [], []
            for fan_in, fan_out in zip(dims[:-1], dims[1:]):
                key, kw, kb = jax.random.split(key, 3)
                w = (jax.random.normal(kw, (fan_in, fan_out), jnp.float32)
                     * jnp.sqrt(2.0 / fan_in))
                bound = 1.0 / np.sqrt(fan_in)
                b = jax.random.uniform(kb, (1, fan_out), jnp.float32, -bound, bound)
                ws.append(w)
                bs.append(b)
            self.nets.append((ws, bs))

        # --- assemble fused block-structured weights (host side, once) -------
        w0 = np.zeros((L, H), np.float32)
        w_hid = [np.zeros((H, H), np.float32) for _ in range(num_hidden)]
        w_out = np.zeros((H, self.rep_pad), np.float32)
        bias_pack = np.zeros((8, BW), np.float32)   # rows 0-4 biases, row 5 gamma mask

        for n, (ws, bs) in enumerate(self.nets):
            lo, hi = n * L, (n + 1) * L
            w0[:, lo:hi] = np.asarray(ws[0])
            bias_pack[0, lo:hi] = np.asarray(bs[0])[0]
            for k in range(num_hidden):
                w_hid[k][lo:hi, lo:hi] = np.asarray(ws[1 + k])
                bias_pack[1 + k, lo:hi] = np.asarray(bs[1 + k])[0]
            off, od = self.offsets[n], self.out_dims[n]
            w_out[lo:hi, off:off + od] = np.asarray(ws[-1])
            bias_pack[4, off:off + od] = np.asarray(bs[-1])[0]
            bias_pack[5, off:off + od // 2] = 1.0   # FiLM "+1" on gamma lanes

        # bf16 weights: halves the dominant weight DMA, native MXU input.
        self.fused_ws = [jnp.asarray(a, dtype=jnp.bfloat16)
                         for a in ([w0] + w_hid + [w_out])]
        self.bias_pack = jnp.asarray(bias_pack)     # f32 bias adds

        self._forward = jax.jit(self._forward_impl)

    # ---- forward -----------------------------------------------------------
    def _forward_impl(self, z):
        rep_slab, gamma_slab = run_film_fused(
            z, self.fused_ws, self.bias_pack, self.rep_pad)
        rep3 = rep_slab[:, None, :self.representation_dim]      # [B, 1, rep_dim]
        # Params are pure slices of the two slabs (no extra elementwise ops).
        # Perf note: consumers that only need the representation should use
        # out['representation'] + self.offsets and skip the params fan-out.
        params = []
        for off, od in zip(self.offsets, self.out_dims):
            C = od // 2
            params.append({
                'gamma': gamma_slab[:, None, off:off + C],       # [B, 1, C]
                'beta':  rep_slab[:, None, off + C:off + od],    # [B, 1, C]
            })
        return {'params': params,
                'representation': rep3,
                'representations': rep3}

    def __call__(self, z):
        return self._forward(z)

    # ---- pure-JAX per-net f32 reference (matches the PyTorch module) --------
    def reference_f32(self, z):
        reps, params = [], []
        for (ws, bs), shape in zip(self.nets, self.param_shapes):
            h = z
            for w, b in zip(ws[:-1], bs[:-1]):
                h = jnp.maximum(h @ w + b, 0.0)
            net_out = h @ ws[-1] + bs[-1]
            C = int(shape[0])
            gamma = net_out[:, None, :C] + 1.0
            beta = net_out[:, None, C:]
            reps += [gamma - 1.0, beta]
            params.append({'gamma': gamma, 'beta': beta})
        return jnp.concatenate(reps, axis=-1), params

    # ---- reference that emulates the kernel's bf16 rounding (tight check) ---
    def reference_bf16(self, z):
        def rq(x):  # round through bf16, compute in f32
            return x.astype(jnp.bfloat16).astype(jnp.float32)
        reps, params = [], []
        for (ws, bs), shape in zip(self.nets, self.param_shapes):
            h = z
            for w, b in zip(ws[:-1], bs[:-1]):
                h = jnp.maximum(rq(h) @ rq(w) + b, 0.0)
            net_out = rq(h) @ rq(ws[-1]) + bs[-1]
            C = int(shape[0])
            gamma = net_out[:, None, :C] + 1.0
            beta = net_out[:, None, C:]
            reps += [gamma - 1.0, beta]
            params.append({'gamma': gamma, 'beta': beta})
        return jnp.concatenate(reps, axis=-1), params


if __name__ == "__main__":
    # Synthetic hypo-module parameter list (name, shape) — e.g. a small MLP
    # hypo network:  Linear(4->16), Linear(16->16), Linear(16->8)
    hypo_param_shapes = [
        ("net.0.weight", (16, 4)),
        ("net.0.bias",   (16,)),
        ("net.1.weight", (16, 16)),
        ("net.1.bias",   (16,)),
        ("net.2.weight", (8, 16)),
        ("net.2.bias",   (8,)),
    ]
    latent_dim = 32
    batch = 2

    film = FILMNetworkPallas(hypo_param_shapes, latent_dim, num_hidden=3, seed=0)

    key = jax.random.PRNGKey(0)
    z = jax.random.normal(key, (batch, latent_dim), jnp.float32)

    out = film(z)
    rep = jax.block_until_ready(out['representation'])
    assert rep.shape == (batch, 1, film.representation_dim), rep.shape

    # Tight check vs a reference that applies the same bf16 rounding as the kernel.
    rep_q, params_q = film.reference_bf16(z)
    assert jnp.allclose(rep, rep_q, atol=2e-3, rtol=2e-3), \
        float(jnp.max(jnp.abs(rep - rep_q)))
    for p, p_ref, (_, shape) in zip(out['params'], params_q, hypo_param_shapes):
        assert p['gamma'].shape == (batch, 1, shape[0])
        assert p['beta'].shape == (batch, 1, shape[0])
        assert jnp.allclose(p['gamma'], p_ref['gamma'], atol=2e-3, rtol=2e-3)
        assert jnp.allclose(p['beta'], p_ref['beta'], atol=2e-3, rtol=2e-3)

    # Loose parity vs the pure-f32 spec reference (error bounded by bf16 weights).
    rep_f32, _ = film.reference_f32(z)
    max_diff_f32 = float(jnp.max(jnp.abs(rep - rep_f32)))
    assert jnp.allclose(rep, rep_f32, atol=0.25, rtol=0.05), max_diff_f32

    print("KERNEL_OK")
</pallas_src>

<mosaic_0001>
module attributes {stable_mosaic.version = 11 : i64} {
  func.func @_film_fused_kernel(%arg0: i32, %arg1: memref<16x32xf32, #tpu.memory_space<vmem>>, %arg2: memref<32x192xbf16, #tpu.memory_space<vmem>>, %arg3: memref<192x192xbf16, #tpu.memory_space<vmem>>, %arg4: memref<192x192xbf16, #tpu.memory_space<vmem>>, %arg5: memref<192x192xbf16, #tpu.memory_space<vmem>>, %arg6: memref<192x256xbf16, #tpu.memory_space<vmem>>, %arg7: memref<8x256xf32, #tpu.memory_space<vmem>>, %arg8: memref<16x256xf32, #tpu.memory_space<vmem>>, %arg9: memref<16x256xf32, #tpu.memory_space<vmem>>) attributes {dimension_semantics = [#tpu.dimension_semantics<parallel>], iteration_bounds = array<i64: 1>, scalar_prefetch = 0 : i64, scratch_operands = 0 : i64, tpu.core_type = #tpu.core_type<tc>, window_params = [{transform_indices = @transform_0, window_bounds = array<i64: 16, 32>}, {pipeline_mode = #tpu.pipeline_mode<synchronous>, transform_indices = @transform_1, window_bounds = array<i64: 32, 192>}, {pipeline_mode = #tpu.pipeline_mode<synchronous>, transform_indices = @transform_2, window_bounds = array<i64: 192, 192>}, {pipeline_mode = #tpu.pipeline_mode<synchronous>, transform_indices = @transform_3, window_bounds = array<i64: 192, 192>}, {pipeline_mode = #tpu.pipeline_mode<synchronous>, transform_indices = @transform_4, window_bounds = array<i64: 192, 192>}, {pipeline_mode = #tpu.pipeline_mode<synchronous>, transform_indices = @transform_5, window_bounds = array<i64: 192, 256>}, {pipeline_mode = #tpu.pipeline_mode<synchronous>, transform_indices = @transform_6, window_bounds = array<i64: 8, 256>}, {transform_indices = @transform_7, window_bounds = array<i64: 16, 256>}, {transform_indices = @transform_8, window_bounds = array<i64: 16, 256>}]} {
    %c0 = arith.constant 0 : index
    %c0_0 = arith.constant 0 : index
    %0 = vector.load %arg1[%c0, %c0_0] : memref<16x32xf32, #tpu.memory_space<vmem>>, vector<16x32xf32>
    %1 = arith.truncf %0 : vector<16x32xf32> to vector<16x32xbf16>
    %c0_1 = arith.constant 0 : index
    %c0_2 = arith.constant 0 : index
    %2 = vector.load %arg2[%c0_1, %c0_2] : memref<32x192xbf16, #tpu.memory_space<vmem>>, vector<32x192xbf16>
    %cst = arith.constant dense<0.000000e+00> : vector<16x192xf32>
    %3 = tpu.matmul %1, %2, %cst {dimension_numbers = #tpu.dot_dimension_numbers<[1], [0], [0], [1], [0, 0, 1, 1], [], []>} : vector<16x32xbf16>, vector<32x192xbf16>, vector<16x192xf32> -> vector<16x192xf32>
    %c0_3 = arith.constant 0 : index
    %c0_4 = arith.constant 0 : index
    %4 = vector.load %arg7[%c0_3, %c0_4] : memref<8x256xf32, #tpu.memory_space<vmem>>, vector<1x192xf32>
    %5 = vector.broadcast %4 : vector<1x192xf32> to vector<16x192xf32>
    %6 = arith.addf %3, %5 : vector<16x192xf32>
    %cst_5 = arith.constant 0.000000e+00 : f32
    %7 = vector.broadcast %cst_5 : f32 to vector<16x192xf32>
    %8 = arith.maximumf %6, %7 : vector<16x192xf32>
    %9 = arith.truncf %8 : vector<16x192xf32> to vector<16x192xbf16>
    %c0_6 = arith.constant 0 : index
    %c0_7 = arith.constant 0 : index
    %10 = vector.load %arg3[%c0_6, %c0_7] : memref<192x192xbf16, #tpu.memory_space<vmem>>, vector<192x192xbf16>
    %cst_8 = arith.constant dense<0.000000e+00> : vector<16x192xf32>
    %11 = tpu.matmul %9, %10, %cst_8 {dimension_numbers = #tpu.dot_dimension_numbers<[1], [0], [0], [1], [0, 0, 1, 1], [], []>} : vector<16x192xbf16>, vector<192x192xbf16>, vector<16x192xf32> -> vector<16x192xf32>
    %c1 = arith.constant 1 : index
    %c0_9 = arith.constant 0 : index
    %12 = vector.load %arg7[%c1, %c0_9] : memref<8x256xf32, #tpu.memory_space<vmem>>, vector<1x192xf32>
    %13 = vector.broadcast %12 : vector<1x192xf32> to vector<16x192xf32>
    %14 = arith.addf %11, %13 : vector<16x192xf32>
    %cst_10 = arith.constant 0.000000e+00 : f32
    %15 = vector.broadcast %cst_10 : f32 to vector<16x192xf32>
    %16 = arith.maximumf %14, %15 : vector<16x192xf32>
    %17 = arith.truncf %16 : vector<16x192xf32> to vector<16x192xbf16>
    %c0_11 = arith.constant 0 : index
    %c0_12 = arith.constant 0 : index
    %18 = vector.load %arg4[%c0_11, %c0_12] : memref<192x192xbf16, #tpu.memory_space<vmem>>, vector<192x192xbf16>
    %cst_13 = arith.constant dense<0.000000e+00> : vector<16x192xf32>
    %19 = tpu.matmul %17, %18, %cst_13 {dimension_numbers = #tpu.dot_dimension_numbers<[1], [0], [0], [1], [0, 0, 1, 1], [], []>} : vector<16x192xbf16>, vector<192x192xbf16>, vector<16x192xf32> -> vector<16x192xf32>
    %c2 = arith.constant 2 : index
    %c0_14 = arith.constant 0 : index
    %20 = vector.load %arg7[%c2, %c0_14] : memref<8x256xf32, #tpu.memory_space<vmem>>, vector<1x192xf32>
    %21 = vector.broadcast %20 : vector<1x192xf32> to vector<16x192xf32>
    %22 = arith.addf %19, %21 : vector<16x192xf32>
    %cst_15 = arith.constant 0.000000e+00 : f32
    %23 = vector.broadcast %cst_15 : f32 to vector<16x192xf32>
    %24 = arith.maximumf %22, %23 : vector<16x192xf32>
    %25 = arith.truncf %24 : vector<16x192xf32> to vector<16x192xbf16>
    %c0_16 = arith.constant 0 : index
    %c0_17 = arith.constant 0 : index
    %26 = vector.load %arg5[%c0_16, %c0_17] : memref<192x192xbf16, #tpu.memory_space<vmem>>, vector<192x192xbf16>
    %cst_18 = arith.constant dense<0.000000e+00> : vector<16x192xf32>
    %27 = tpu.matmul %25, %26, %cst_18 {dimension_numbers = #tpu.dot_dimension_numbers<[1], [0], [0], [1], [0, 0, 1, 1], [], []>} : vector<16x192xbf16>, vector<192x192xbf16>, vector<16x192xf32> -> vector<16x192xf32>
    %c3 = arith.constant 3 : index
    %c0_19 = arith.constant 0 : index
    %28 = vector.load %arg7[%c3, %c0_19] : memref<8x256xf32, #tpu.memory_space<vmem>>, vector<1x192xf32>
    %29 = vector.broadcast %28 : vector<1x192xf32> to vector<16x192xf32>
    %30 = arith.addf %27, %29 : vector<16x192xf32>
    %cst_20 = arith.constant 0.000000e+00 : f32
    %31 = vector.broadcast %cst_20 : f32 to vector<16x192xf32>
    %32 = arith.maximumf %30, %31 : vector<16x192xf32>
    %33 = arith.truncf %32 : vector<16x192xf32> to vector<16x192xbf16>
    %c0_21 = arith.constant 0 : index
    %c0_22 = arith.constant 0 : index
    %34 = vector.load %arg6[%c0_21, %c0_22] : memref<192x256xbf16, #tpu.memory_space<vmem>>, vector<192x256xbf16>
    %cst_23 = arith.constant dense<0.000000e+00> : vector<16x256xf32>
    %35 = tpu.matmul %33, %34, %cst_23 {dimension_numbers = #tpu.dot_dimension_numbers<[1], [0], [0], [1], [0, 0, 1, 1], [], []>} : vector<16x192xbf16>, vector<192x256xbf16>, vector<16x256xf32> -> vector<16x256xf32>
    %c4 = arith.constant 4 : index
    %c0_24 = arith.constant 0 : index
    %36 = vector.load %arg7[%c4, %c0_24] : memref<8x256xf32, #tpu.memory_space<vmem>>, vector<1x256xf32>
    %37 = vector.broadcast %36 : vector<1x256xf32> to vector<16x256xf32>
    %38 = arith.addf %35, %37 : vector<16x256xf32>
    %c0_25 = arith.constant 0 : index
    %c0_26 = arith.constant 0 : index
    %39 = vector.load %arg8[%c0_25, %c0_26] : memref<16x256xf32, #tpu.memory_space<vmem>>, vector<16x256xf32>
    tpu.vector_store %arg8[%c0_25, %c0_26], %38 {strides = array<i32>} : memref<16x256xf32, #tpu.memory_space<vmem>>, vector<16x256xf32>,
    %c5 = arith.constant 5 : index
    %c0_27 = arith.constant 0 : index
    %40 = vector.load %arg7[%c5, %c0_27] : memref<8x256xf32, #tpu.memory_space<vmem>>, vector<1x256xf32>
    %41 = vector.broadcast %40 : vector<1x256xf32> to vector<16x256xf32>
    %42 = arith.addf %38, %41 : vector<16x256xf32>
    %c0_28 = arith.constant 0 : index
    %c0_29 = arith.constant 0 : index
    %43 = vector.load %arg9[%c0_28, %c0_29] : memref<16x256xf32, #tpu.memory_space<vmem>>, vector<16x256xf32>
    tpu.vector_store %arg9[%c0_28, %c0_29], %42 {strides = array<i32>} : memref<16x256xf32, #tpu.memory_space<vmem>>, vector<16x256xf32>,
    return
  }
  func.func @transform_0(%arg0: i32) -> (i32, i32) {
    %c0_i32 = arith.constant 0 : i32
    %c0_i32_0 = arith.constant 0 : i32
    return %arg0, %c0_i32 : i32, i32
  }
  func.func @transform_1(%arg0: i32) -> (i32, i32) {
    %c0_i32 = arith.constant 0 : i32
    %c0_i32_0 = arith.constant 0 : i32
    %c0_i32_1 = arith.constant 0 : i32
    return %c0_i32, %c0_i32_0 : i32, i32
  }
  func.func @transform_2(%arg0: i32) -> (i32, i32) {
    %c0_i32 = arith.constant 0 : i32
    %c0_i32_0 = arith.constant 0 : i32
    %c0_i32_1 = arith.constant 0 : i32
    return %c0_i32, %c0_i32_0 : i32, i32
  }
  func.func @transform_3(%arg0: i32) -> (i32, i32) {
    %c0_i32 = arith.constant 0 : i32
    %c0_i32_0 = arith.constant 0 : i32
    %c0_i32_1 = arith.constant 0 : i32
    return %c0_i32, %c0_i32_0 : i32, i32
  }
  func.func @transform_4(%arg0: i32) -> (i32, i32) {
    %c0_i32 = arith.constant 0 : i32
    %c0_i32_0 = arith.constant 0 : i32
    %c0_i32_1 = arith.constant 0 : i32
    return %c0_i32, %c0_i32_0 : i32, i32
  }
  func.func @transform_5(%arg0: i32) -> (i32, i32) {
    %c0_i32 = arith.constant 0 : i32
    %c0_i32_0 = arith.constant 0 : i32
    %c0_i32_1 = arith.constant 0 : i32
    return %c0_i32, %c0_i32_0 : i32, i32
  }
  func.func @transform_6(%arg0: i32) -> (i32, i32) {
    %c0_i32 = arith.constant 0 : i32
    %c0_i32_0 = arith.constant 0 : i32
    %c0_i32_1 = arith.constant 0 : i32
    return %c0_i32, %c0_i32_0 : i32, i32
  }
  func.func @transform_7(%arg0: i32) -> (i32, i32) {
    %c0_i32 = arith.constant 0 : i32
    %c0_i32_0 = arith.constant 0 : i32
    return %arg0, %c0_i32 : i32, i32
  }
  func.func @transform_8(%arg0: i32) -> (i32, i32) {
    %c0_i32 = arith.constant 0 : i32
    %c0_i32_0 = arith.constant 0 : i32
    return %arg0, %c0_i32 : i32, i32
  }
}

</mosaic_0001>

<bundles_post_ra>
// kernel: _forward_impl.1
= control target key start
LH: loop header
LB: loop body
LE: loop exit
PB: predicated region body
PF: predicated region fallthrough
CT: control target
= control target key end

     0   :  { %v1246_v1 = vmov 0   ;;  %vm68_vm0 = vcmask 261120   ;;  %v38_v52 = vlaneseq  ;;  %vm278_vm1 = vcmask 523264   ;;  %s1660_s1 = inlined_call_operand.vmem [shape: bf16[32,192], index: 1, kind: input, shape index: {}]   ;;  %s1661_s0 = inlined_call_operand.vmem [shape: f32[16,32], index: 0, kind: input, shape index: {}]   ;;  %s1662_s2 = inlined_call_operand.vmem [shape: bf16[192,192], index: 2, kind: input, shape index: {}]   ;;  %s1663_s3 = inlined_call_operand.vmem [shape: bf16[192,192], index: 3, kind: input, shape index: {}]   ;;  %s1664_s6 = inlined_call_operand.vmem [shape: f32[8,256], index: 6, kind: input, shape index: {}]   ;;  %s1665_s4 = inlined_call_operand.vmem [shape: bf16[192,192], index: 4, kind: input, shape index: {}]   ;;  %s1666_s5 = inlined_call_operand.vmem [shape: bf16[192,256], index: 5, kind: input, shape index: {}]   ;;  %s1667_s7 = inlined_call_operand.vmem [shape: f32[16,256], index: 7, kind: output, shape index: {0}]   ;;  %s1668_s8 = inlined_call_operand.vmem [shape: f32[16,256], index: 8, kind: output, shape index: {1}]  }
   0x1   :  { %v1096_v0 = vld [vmem:[%s1660_s1 + $0x4] ss:$8 sps:$4 sm:$0xff]   ;;  %104 = vmatprep.mubr.bf16.mxu0 %v1246_v1  ;;  %v1098_v2 = vld [vmem:[%s1660_s1] ss:$8 sps:$4 sm:$0xff]   ;;  %v1099_v3 = vld [vmem:[%s1660_s1 + $0x14] ss:$8 sps:$4 sm:$0xff]  }
   0x2   :  { %72 = vmatprep.subr.bf16.mxu0 %v1096_v0  ;;  %v1101_v4 = vld [vmem:[%s1660_s1 + $0x10] ss:$8 sps:$4 sm:$0xff]   ;;  %v29_v5 = vld [vmem:[%s1661_s0] sm:$0xff]  ;;  %v30_v6 = vld [vmem:[%s1661_s0 + $0x8] sm:$0xff]  ;;  %v39_v53 = vshrl.u32 %v38_v52, 7 }
   0x3   :  { %73 = vmatpush1.bf16.msra.mxu0 %v1098_v2  ;;  %v1102_v7 = vld [vmem:[%s1662_s2 + $0x4] ss:$8 sps:$4 sm:$0xff]   ;;  %v1104_v8 = vld [vmem:[%s1662_s2] ss:$8 sps:$4 sm:$0xff]   ;;  %v1105_v9 = vld [vmem:[%s1662_s2 + $0x14] ss:$8 sps:$4 sm:$0xff]   ;;  %v31_v10 = vpack.c.bf16 %v30_v6, %v29_v5 }
   0x4   :  { %74 = vmatprep.subr.bf16.mxu0 %v1099_v3  ;;  %282 = vmatprep.subr.bf16.mxu1 %v1102_v7  ;;  %v1107_v11 = vld [vmem:[%s1662_s2 + $0x10] ss:$8 sps:$4 sm:$0xff]   ;;  %v1108_v12 = vld [vmem:[%s1662_s2 + $0x24] ss:$8 sps:$4 sm:$0xff]   ;;  %v1110_v13 = vld [vmem:[%s1662_s2 + $0x20] ss:$8 sps:$4 sm:$0xff]  }
   0x5   :  { %283 = vmatpush1.bf16.msra.mxu1 %v1104_v8  ;;  %v1111_v14 = vld [vmem:[%s1662_s2 + $0x34] ss:$8 sps:$4 sm:$0xff]   ;;  %v1113_v15 = vld [vmem:[%s1662_s2 + $0x30] ss:$8 sps:$4 sm:$0xff]   ;;  %v1114_v16 = vld [vmem:[%s1662_s2 + $0x44] ss:$8 sps:$4 sm:$0xff]  }
   0x6   :  { %284 = vmatprep.subr.bf16.mxu1 %v1105_v9  ;;  %v1116_v17 = vld [vmem:[%s1662_s2 + $0x40] ss:$8 sps:$4 sm:$0xff]   ;;  %v1117_v18 = vld [vmem:[%s1662_s2 + $0x54] ss:$8 sps:$4 sm:$0xff]   ;;  %v1119_v19 = vld [vmem:[%s1662_s2 + $0x50] ss:$8 sps:$4 sm:$0xff]  }
   0x7   :  { %75 = vmatpush1.bf16.msra.mxu0 %v1101_v4  ;;  %v1120_v20 = vld [vmem:[%s1662_s2 + $0x64] ss:$8 sps:$4 sm:$0xff]   ;;  %v1122_v21 = vld [vmem:[%s1662_s2 + $0x60] ss:$8 sps:$4 sm:$0xff]   ;;  %v1123_v22 = vld [vmem:[%s1662_s2 + $0x74] ss:$8 sps:$4 sm:$0xff]  }
   0x8   :  { %v1125_v23 = vld [vmem:[%s1662_s2 + $0x70] ss:$8 sps:$4 sm:$0xff]   ;;  %v1126_v24 = vld [vmem:[%s1662_s2 + $0x84] ss:$8 sps:$4 sm:$0xff]   ;;  %v1128_v25 = vld [vmem:[%s1662_s2 + $0x80] ss:$8 sps:$4 sm:$0xff]  }
   0x9   :  { %285 = vmatpush1.bf16.msra.mxu1 %v1107_v11  ;;  %v1129_v26 = vld [vmem:[%s1662_s2 + $0x94] ss:$8 sps:$4 sm:$0xff]   ;;  %v1131_v27 = vld [vmem:[%s1662_s2 + $0x90] ss:$8 sps:$4 sm:$0xff]   ;;  %v1132_v28 = vld [vmem:[%s1662_s2 + $0xa4] ss:$8 sps:$4 sm:$0xff]  }
   0xa   :  { %989 = vmatmul.mubr.msk.bf16.vlgmr.msra.gmra.mrb[0].mxu0 %vm68_vm0, %v31_v10  ;;  %286 = vmatprep.subr.bf16.mxu1 %v1108_v12  ;;  %v1134_v29 = vld [vmem:[%s1662_s2 + $0xa0] ss:$8 sps:$4 sm:$0xff]   ;;  %v1135_v30 = vld [vmem:[%s1662_s2 + $0xb4] ss:$8 sps:$4 sm:$0xff]   ;;  %v1137_v31 = vld [vmem:[%s1662_s2 + $0xb0] ss:$8 sps:$4 sm:$0xff]  }
   0xb   :  { %v1138_v32 = vld [vmem:[%s1663_s3] ss:$8 sps:$4 sm:$0xff]   ;;  %v1140_v33 = vld [vmem:[%s1663_s3 + $0x4] ss:$8 sps:$4 sm:$0xff]   ;;  %v1143_v34 = vld [vmem:[%s1663_s3 + $0x14] ss:$8 sps:$4 sm:$0xff]  }
   0xc   :  { %491 = vmatprep.subr.bf16.mxu0 %v1140_v33  ;;  %v1141_v35 = vld [vmem:[%s1663_s3 + $0x10] ss:$8 sps:$4 sm:$0xff]   ;;  %v1146_v36 = vld [vmem:[%s1663_s3 + $0x24] ss:$8 sps:$4 sm:$0xff]   ;;  %v1144_v37 = vld [vmem:[%s1663_s3 + $0x20] ss:$8 sps:$4 sm:$0xff]  }
   0xd   :  { %287 = vmatpush1.bf16.msra.mxu1 %v1110_v13  ;;  %492 = vmatpush1.bf16.msra.mxu0 %v1138_v32  ;;  %v1149_v38 = vld [vmem:[%s1663_s3 + $0x34] ss:$8 sps:$4 sm:$0xff]   ;;  %v1147_v39 = vld [vmem:[%s1663_s3 + $0x30] ss:$8 sps:$4 sm:$0xff]   ;;  %v1152_v40 = vld [vmem:[%s1663_s3 + $0x44] ss:$8 sps:$4 sm:$0xff]  }
   0xe   :  { %288 = vmatprep.subr.bf16.mxu1 %v1111_v14  ;;  %493 = vmatprep.subr.bf16.mxu0 %v1143_v34  ;;  %v1150_v41 = vld [vmem:[%s1663_s3 + $0x40] ss:$8 sps:$4 sm:$0xff]   ;;  %v1155_v42 = vld [vmem:[%s1663_s3 + $0x54] ss:$8 sps:$4 sm:$0xff]   ;;  %v1153_v43 = vld [vmem:[%s1663_s3 + $0x50] ss:$8 sps:$4 sm:$0xff]  }
   0xf   :  { %v1158_v44 = vld [vmem:[%s1663_s3 + $0x64] ss:$8 sps:$4 sm:$0xff]   ;;  %v1156_v45 = vld [vmem:[%s1663_s3 + $0x60] ss:$8 sps:$4 sm:$0xff]   ;;  %v1161_v46 = vld [vmem:[%s1663_s3 + $0x74] ss:$8 sps:$4 sm:$0xff]  }
  0x10   :  { %v1159_v47 = vld [vmem:[%s1663_s3 + $0x70] ss:$8 sps:$4 sm:$0xff]   ;;  %v1164_v48 = vld [vmem:[%s1663_s3 + $0x84] ss:$8 sps:$4 sm:$0xff]   ;;  %v1162_v49 = vld [vmem:[%s1663_s3 + $0x80] ss:$8 sps:$4 sm:$0xff]  }
  0x11   :  { %289 = vmatpush1.bf16.msra.mxu1 %v1113_v15  ;;  %494 = vmatpush1.bf16.msra.mxu0 %v1141_v35  ;;  %v1167_v50 = vld [vmem:[%s1663_s3 + $0x94] ss:$8 sps:$4 sm:$0xff]   ;;  %v1165_v51 = vld [vmem:[%s1663_s3 + $0x90] ss:$8 sps:$4 sm:$0xff]   ;;  %v1442_v54 = vsub.s32 0, %v39_v53  ;;  %v1447_v56 = vsub.s32 1, %v39_v53 }
  0x12   :  { %290 = vmatprep.subr.bf16.mxu1 %v1114_v16  ;;  %495 = vmatprep.subr.bf16.mxu0 %v1146_v36  ;;  %v36_v55 = vld [vmem:[%s1664_s6] ss:$8 sm:$0x3]  ;;  %v1170_v9 = vld [vmem:[%s1663_s3 + $0xa4] ss:$8 sps:$4 sm:$0xff]  }
  0x13   :  { %v41_v57 = vrot.slane %v36_v55, %v1442_v54  ;;  %v45_v58 = vrot.slane %v36_v55, %v1447_v56  ;;  %v1168_v10 = vld [vmem:[%s1663_s3 + $0xa0] ss:$8 sps:$4 sm:$0xff]   ;;  %v1173_v11 = vld [vmem:[%s1663_s3 + $0xb4] ss:$8 sps:$4 sm:$0xff]   ;;  %v1171_v12 = vld [vmem:[%s1663_s3 + $0xb0] ss:$8 sps:$4 sm:$0xff]  }
  0x14   :  { %v1174_v13 = vld [vmem:[%s1665_s4] ss:$8 sps:$4 sm:$0xff]   ;;  %v1176_v14 = vld [vmem:[%s1665_s4 + $0x4] ss:$8 sps:$4 sm:$0xff]   ;;  %v1179_v15 = vld [vmem:[%s1665_s4 + $0x14] ss:$8 sps:$4 sm:$0xff]  }
  0x15   :  { %291 = vmatpush1.bf16.msra.mxu1 %v1116_v17  ;;  %496 = vmatpush1.bf16.msra.mxu0 %v1144_v37  ;;  %v1177_v16 = vld [vmem:[%s1665_s4 + $0x10] ss:$8 sps:$4 sm:$0xff]   ;;  %v1182_v17 = vld [vmem:[%s1665_s4 + $0x24] ss:$8 sps:$4 sm:$0xff]   ;;  %v1209_v52 = vld [vmem:[%s1665_s4 + $0xb4] ss:$8 sps:$4 sm:$0xff]  }
  0x16   :  { %292 = vmatprep.subr.bf16.mxu1 %v1117_v18  ;;  %497 = vmatprep.subr.bf16.mxu0 %v1149_v38  ;;  %v1180_v18 = vld [vmem:[%s1665_s4 + $0x20] ss:$8 sps:$4 sm:$0xff]   ;;  %v1201_v32 = vld [vmem:[%s1665_s4 + $0x90] ss:$8 sps:$4 sm:$0xff]  }
  0x17   :  { %v990_v33 = vld [vmem:[%s1664_s6 + $0x1] ss:$8 sm:$0x3]  ;;  %v1207_v53 = vld [vmem:[%s1665_s4 + $0xb0] ss:$8 sps:$4 sm:$0xff]  }
  0x18   :  { %v151_v34 = vrot.slane %v990_v33, %v1442_v54  ;;  %v155_v35 = vrot.slane %v990_v33, %v1447_v56  ;;  %v1210_v55 = vld [vmem:[%s1666_s5] ss:$8 sps:$4 sm:$0xff]  }
  0x19   :  { %293 = vmatpush1.bf16.msra.mxu1 %v1119_v19  ;;  %498 = vmatpush1.bf16.msra.mxu0 %v1147_v39  ;;  %v1185_v19 = vld [vmem:[%s1665_s4 + $0x34] ss:$8 sps:$4 sm:$0xff]   ;;  %v1042_v33 = vld [vmem:[%s1664_s6 + $0x3] ss:$8 sm:$0x3] }
  0x1a   :  { %294 = vmatprep.subr.bf16.mxu1 %v1120_v20  ;;  %499 = vmatprep.subr.bf16.mxu0 %v1152_v40  ;;  %v1183_v20 = vld [vmem:[%s1665_s4 + $0x30] ss:$8 sps:$4 sm:$0xff]  }
  0x1d   :  { %295 = vmatpush1.bf16.msra.mxu1 %v1122_v21  ;;  %500 = vmatpush1.bf16.msra.mxu0 %v1150_v41  ;;  %v1188_v21 = vld [vmem:[%s1665_s4 + $0x44] ss:$8 sps:$4 sm:$0xff]  }
  0x1e   :  { %296 = vmatprep.subr.bf16.mxu1 %v1123_v22  ;;  %501 = vmatprep.subr.bf16.mxu0 %v1155_v42  ;;  %v1186_v22 = vld [vmem:[%s1665_s4 + $0x40] ss:$8 sps:$4 sm:$0xff]  }
  0x21   :  { %297 = vmatpush1.bf16.msra.mxu1 %v1125_v23  ;;  %502 = vmatpush1.bf16.msra.mxu0 %v1153_v43  ;;  %v1191_v23 = vld [vmem:[%s1665_s4 + $0x54] ss:$8 sps:$4 sm:$0xff]  }
  0x22   :  { %298 = vmatprep.subr.bf16.mxu1 %v1126_v24  ;;  %503 = vmatprep.subr.bf16.mxu0 %v1158_v44  ;;  %v1189_v24 = vld [vmem:[%s1665_s4 + $0x50] ss:$8 sps:$4 sm:$0xff]  }
  0x25   :  { %299 = vmatpush1.bf16.msra.mxu1 %v1128_v25  ;;  %504 = vmatpush1.bf16.msra.mxu0 %v1156_v45  ;;  %v1194_v25 = vld [vmem:[%s1665_s4 + $0x64] ss:$8 sps:$4 sm:$0xff]  }
  0x26   :  { %300 = vmatprep.subr.bf16.mxu1 %v1129_v26  ;;  %505 = vmatprep.subr.bf16.mxu0 %v1161_v46  ;;  %v1192_v26 = vld [vmem:[%s1665_s4 + $0x60] ss:$8 sps:$4 sm:$0xff]  }
  0x29   :  { %301 = vmatpush1.bf16.msra.mxu1 %v1131_v27  ;;  %506 = vmatpush1.bf16.msra.mxu0 %v1159_v47  ;;  %v1197_v27 = vld [vmem:[%s1665_s4 + $0x74] ss:$8 sps:$4 sm:$0xff]  }
  0x2a   :  { %302 = vmatprep.subr.bf16.mxu1 %v1132_v28  ;;  %507 = vmatprep.subr.bf16.mxu0 %v1164_v48  ;;  %v1195_v28 = vld [vmem:[%s1665_s4 + $0x70] ss:$8 sps:$4 sm:$0xff]  }
  0x2d   :  { %303 = vmatpush1.bf16.msra.mxu1 %v1134_v29  ;;  %508 = vmatpush1.bf16.msra.mxu0 %v1162_v49  ;;  %v1200_v29 = vld [vmem:[%s1665_s4 + $0x84] ss:$8 sps:$4 sm:$0xff]  }
  0x2e   :  { %304 = vmatprep.subr.bf16.mxu1 %v1135_v30  ;;  %509 = vmatprep.subr.bf16.mxu0 %v1167_v50  ;;  %v1198_v30 = vld [vmem:[%s1665_s4 + $0x80] ss:$8 sps:$4 sm:$0xff]   ;;  %v1206_v50 = vld [vmem:[%s1665_s4 + $0xa4] ss:$8 sps:$4 sm:$0xff]  }
  0x31   :  { %305 = vmatpush1.bf16.msra.mxu1 %v1137_v31  ;;  %510 = vmatpush1.bf16.msra.mxu0 %v1165_v51  ;;  %v1203_v31 = vld [vmem:[%s1665_s4 + $0x94] ss:$8 sps:$4 sm:$0xff]   ;;  %v1204_v51 = vld [vmem:[%s1665_s4 + $0xa0] ss:$8 sps:$4 sm:$0xff]  }
  0x32   :  { %511 = vmatprep.subr.bf16.mxu0 %v1170_v9  ;;  %700 = vmatprep.subr.bf16.mxu1 %v1176_v14  ;;  %v1234_v9 = vld [vmem:[%s1666_s5 + $0x80] ss:$8 sps:$4 sm:$0xff]  }
  0x35   :  { %512 = vmatpush1.bf16.msra.mxu0 %v1168_v10  ;;  %v1239_v10 = vld [vmem:[%s1666_s5 + $0x94] ss:$8 sps:$4 sm:$0xff]  }
  0x36   :  { %513 = vmatprep.subr.bf16.mxu0 %v1173_v11  ;;  %v1237_v11 = vld [vmem:[%s1666_s5 + $0x90] ss:$8 sps:$4 sm:$0xff]  }
  0x39   :  { %514 = vmatpush1.bf16.msra.mxu0 %v1171_v12  ;;  %v1016_v12 = vld [vmem:[%s1664_s6 + $0x2] ss:$8 sm:$0x3] }
  0x3a   :  { %v365_v14 = vrot.slane %v1016_v12, %v1447_v56 }
  0xdd   :  { %v106_v59 = vpop.f32.mrb[0].mxu0 }
  0xde   :  { %v107_v60 = vadd.f32 %v106_v59, %v41_v57  ;;  %v108_v61 = vpop.f32.mrb[1].mxu0  ;;  %v1213_v59 = vld [vmem:[%s1666_s5 + $0x10] ss:$8 sps:$4 sm:$0xff]  }
  0xdf   :  { %v109_v62 = vadd.f32 %v108_v61, %v45_v58  ;;  %v110_v63 = vpop.f32.mrb[2].mxu0  ;;  %v1216_v61 = vld [vmem:[%s1666_s5 + $0x20] ss:$8 sps:$4 sm:$0xff]  }
  0xe0   :  { %v111_v0 = vadd.f32 %v110_v63, %v41_v57  ;;  %v112_v1 = vpop.f32.mrb[3].mxu0  ;;  %v115_v3 = vmax.f32 %v107_v60, 0.0  ;;  %v1212_v57 = vld [vmem:[%s1666_s5 + $0x4] ss:$8 sps:$4 sm:$0xff]   ;;  %v1219_v63 = vld [vmem:[%s1666_s5 + $0x30] ss:$8 sps:$4 sm:$0xff]  }
  0xe1   :  { %v113_v2 = vadd.f32 %v112_v1, %v45_v58  ;;  %v116_v5 = vmax.f32 %v109_v62, 0.0  ;;  %v1215_v58 = vld [vmem:[%s1666_s5 + $0x14] ss:$8 sps:$4 sm:$0xff]   ;;  %909 = vmatprep.subr.bf16.mxu0 %v1212_v57  ;;  %v1218_v60 = vld [vmem:[%s1666_s5 + $0x24] ss:$8 sps:$4 sm:$0xff]  }
  0xe2   :  { %v117_v4 = vmax.f32 %v111_v0, 0.0  ;;  %v1221_v62 = vld [vmem:[%s1666_s5 + $0x34] ss:$8 sps:$4 sm:$0xff]   ;;  %v1224_v0 = vld [vmem:[%s1666_s5 + $0x44] ss:$8 sps:$4 sm:$0xff]  }
  0xe3   :  { %v118_v6 = vmax.f32 %v113_v2, 0.0  ;;  %v1222_v1 = vld [vmem:[%s1666_s5 + $0x40] ss:$8 sps:$4 sm:$0xff]   ;;  %v1227_v2 = vld [vmem:[%s1666_s5 + $0x54] ss:$8 sps:$4 sm:$0xff]  }
  0xe4   :  { %v119_v7 = vpack.c.bf16 %v117_v4, %v115_v3  ;;  %v1225_v3 = vld [vmem:[%s1666_s5 + $0x50] ss:$8 sps:$4 sm:$0xff]   ;;  %v1230_v4 = vld [vmem:[%s1666_s5 + $0x64] ss:$8 sps:$4 sm:$0xff]  }
  0xe5   :  { %v120_v8 = vpack.c.bf16 %v118_v6, %v116_v5  ;;  %v1228_v5 = vld [vmem:[%s1666_s5 + $0x60] ss:$8 sps:$4 sm:$0xff]   ;;  %v1233_v6 = vld [vmem:[%s1666_s5 + $0x74] ss:$8 sps:$4 sm:$0xff]  }
  0xe7   :  { %1015 = vmatprep.mubr.msk.bf16.mxu1 %vm278_vm1, %v120_v8  ;;  %v1236_v8 = vld [vmem:[%s1666_s5 + $0x84] ss:$8 sps:$4 sm:$0xff]  }
  0xe8   :  { %315 = vmatmul.mubr.bf16.vlgmr.msra.gmra.mrb[0].mxu1 %v119_v7  ;;  %v1231_v7 = vld [vmem:[%s1666_s5 + $0x70] ss:$8 sps:$4 sm:$0xff]  }
  0xe9   :  { %701 = vmatpush1.bf16.msra.mxu1 %v1174_v13  ;;  %v361_v13 = vrot.slane %v1016_v12, %v1442_v54 }
  0xea   :  { %702 = vmatprep.subr.bf16.mxu1 %v1179_v15 }
  0xed   :  { %703 = vmatpush1.bf16.msra.mxu1 %v1177_v16 }
  0xee   :  { %704 = vmatprep.subr.bf16.mxu1 %v1182_v17 }
  0xf1   :  { %705 = vmatpush1.bf16.msra.mxu1 %v1180_v18 }
  0xf2   :  { %706 = vmatprep.subr.bf16.mxu1 %v1185_v19 }
  0xf5   :  { %707 = vmatpush1.bf16.msra.mxu1 %v1183_v20 }
  0xf6   :  { %708 = vmatprep.subr.bf16.mxu1 %v1188_v21 }
  0xf9   :  { %709 = vmatpush1.bf16.msra.mxu1 %v1186_v22 }
  0xfa   :  { %710 = vmatprep.subr.bf16.mxu1 %v1191_v23 }
  0xfd   :  { %711 = vmatpush1.bf16.msra.mxu1 %v1189_v24 }
  0xfe   :  { %712 = vmatprep.subr.bf16.mxu1 %v1194_v25 }
 0x101   :  { %713 = vmatpush1.bf16.msra.mxu1 %v1192_v26 }
 0x102   :  { %714 = vmatprep.subr.bf16.mxu1 %v1197_v27 }
 0x105   :  { %715 = vmatpush1.bf16.msra.mxu1 %v1195_v28 }
 0x106   :  { %716 = vmatprep.subr.bf16.mxu1 %v1200_v29  ;;  %v1242_v29 = vld [vmem:[%s1666_s5 + $0xa4] ss:$8 sps:$4 sm:$0xff]  }
 0x109   :  { %717 = vmatpush1.bf16.msra.mxu1 %v1198_v30  ;;  %v1240_v30 = vld [vmem:[%s1666_s5 + $0xa0] ss:$8 sps:$4 sm:$0xff]  }
 0x10a   :  { %718 = vmatprep.subr.bf16.mxu1 %v1203_v31  ;;  %v1245_v31 = vld [vmem:[%s1666_s5 + $0xb4] ss:$8 sps:$4 sm:$0xff]  }
 0x10d   :  { %719 = vmatpush1.bf16.msra.mxu1 %v1201_v32  ;;  %v1243_v32 = vld [vmem:[%s1666_s5 + $0xb0] ss:$8 sps:$4 sm:$0xff]  }
 0x10e   :  { %720 = vmatprep.subr.bf16.mxu1 %v1206_v50  ;;  %v1068_v50 = vld [vmem:[%s1664_s6 + $0x4] ss:$8 sm:$0x3] }
 0x111   :  { %721 = vmatpush1.bf16.msra.mxu1 %v1204_v51  ;;  %v1094_v51 = vld [vmem:[%s1664_s6 + $0x5] ss:$8 sm:$0x3] }
 0x112   :  { %722 = vmatprep.subr.bf16.mxu1 %v1209_v52  ;;  %v779_v52 = vrot.slane %v1068_v50, %v1442_v54 }
 0x115   :  { %723 = vmatpush1.bf16.msra.mxu1 %v1207_v53  ;;  %v783_v53 = vrot.slane %v1068_v50, %v1447_v56 }
 0x1bb   :  { %v316_v36 = vpop.f32.mrb[0].mxu1 }
 0x1bc   :  { %v317_v37 = vadd.f32 %v316_v36, %v151_v34  ;;  %v318_v38 = vpop.f32.mrb[1].mxu1 }
 0x1bd   :  { %v319_v39 = vadd.f32 %v318_v38, %v155_v35  ;;  %v320_v40 = vpop.f32.mrb[2].mxu1 }
 0x1be   :  { %v321_v41 = vadd.f32 %v320_v40, %v151_v34  ;;  %v322_v42 = vpop.f32.mrb[3].mxu1  ;;  %v325_v44 = vmax.f32 %v317_v37, 0.0  ;;  %v570_v34 = vrot.slane %v1042_v33, %v1442_v54 }
 0x1bf   :  { %v323_v43 = vadd.f32 %v322_v42, %v155_v35  ;;  %v326_v46 = vmax.f32 %v319_v39, 0.0  ;;  %v574_v35 = vrot.slane %v1042_v33, %v1447_v56 }
 0x1c0   :  { %v327_v45 = vmax.f32 %v321_v41, 0.0 }
 0x1c1   :  { %v328_v47 = vmax.f32 %v323_v43, 0.0 }
 0x1c2   :  { %v329_v48 = vpack.c.bf16 %v327_v45, %v325_v44 }
 0x1c3   :  { %v330_v49 = vpack.c.bf16 %v328_v47, %v326_v46 }
 0x1c5   :  { %1041 = vmatprep.mubr.msk.bf16.mxu0 %vm278_vm1, %v330_v49 }
 0x1c6   :  { %524 = vmatmul.mubr.bf16.vlgmr.msra.gmra.mrb[4].mxu0 %v329_v48 }
 0x1c7   :  { %910 = vmatpush1.bf16.msra.mxu0 %v1210_v55  ;;  %v962_v55 = vrot.slane %v1094_v51, %v1442_v54 }
 0x1c8   :  { %911 = vmatprep.subr.bf16.mxu0 %v1215_v58  ;;  %v966_v58 = vrot.slane %v1094_v51, %v1447_v56 }
 0x1cb   :  { %912 = vmatpush1.bf16.msra.mxu0 %v1213_v59 }
 0x1cc   :  { %913 = vmatprep.subr.bf16.mxu0 %v1218_v60 }
 0x1cf   :  { %914 = vmatpush1.bf16.msra.mxu0 %v1216_v61 }
 0x1d0   :  { %915 = vmatprep.subr.bf16.mxu0 %v1221_v62 }
 0x1d3   :  { %916 = vmatpush1.bf16.msra.mxu0 %v1219_v63 }
 0x1d4   :  { %917 = vmatprep.subr.bf16.mxu0 %v1224_v0 }
 0x1d7   :  { %918 = vmatpush1.bf16.msra.mxu0 %v1222_v1 }
 0x1d8   :  { %919 = vmatprep.subr.bf16.mxu0 %v1227_v2 }
 0x1db   :  { %920 = vmatpush1.bf16.msra.mxu0 %v1225_v3 }
 0x1dc   :  { %921 = vmatprep.subr.bf16.mxu0 %v1230_v4 }
 0x1df   :  { %922 = vmatpush1.bf16.msra.mxu0 %v1228_v5 }
 0x1e0   :  { %923 = vmatprep.subr.bf16.mxu0 %v1233_v6 }
 0x1e3   :  { %924 = vmatpush1.bf16.msra.mxu0 %v1231_v7 }
 0x1e4   :  { %925 = vmatprep.subr.bf16.mxu0 %v1236_v8 }
 0x1e7   :  { %926 = vmatpush1.bf16.msra.mxu0 %v1234_v9 }
 0x1e8   :  { %927 = vmatprep.subr.bf16.mxu0 %v1239_v10 }
 0x1eb   :  { %928 = vmatpush1.bf16.msra.mxu0 %v1237_v11 }
 0x1ec   :  { %929 = vmatprep.subr.bf16.mxu0 %v1242_v29 }
 0x1ef   :  { %930 = vmatpush1.bf16.msra.mxu0 %v1240_v30 }
 0x1f0   :  { %931 = vmatprep.subr.bf16.mxu0 %v1245_v31 }
 0x1f3   :  { %932 = vmatpush1.bf16.msra.mxu0 %v1243_v32 }
 0x299   :  { %v525_v15 = vpop.f32.mrb[4].mxu0 }
 0x29a   :  { %v526_v16 = vadd.f32 %v525_v15, %v361_v13  ;;  %v527_v17 = vpop.f32.mrb[5].mxu0 }
 0x29b   :  { %v528_v18 = vadd.f32 %v527_v17, %v365_v14  ;;  %v529_v19 = vpop.f32.mrb[6].mxu0 }
 0x29c   :  { %v530_v20 = vadd.f32 %v529_v19, %v361_v13  ;;  %v531_v21 = vpop.f32.mrb[7].mxu0  ;;  %v534_v23 = vmax.f32 %v526_v16, 0.0 }
 0x29d   :  { %v532_v22 = vadd.f32 %v531_v21, %v365_v14  ;;  %v535_v25 = vmax.f32 %v528_v18, 0.0 }
 0x29e   :  { %v536_v24 = vmax.f32 %v530_v20, 0.0 }
 0x29f   :  { %v537_v26 = vmax.f32 %v532_v22, 0.0 }
 0x2a0   :  { %v538_v27 = vpack.c.bf16 %v536_v24, %v534_v23 }
 0x2a1   :  { %v539_v28 = vpack.c.bf16 %v537_v26, %v535_v25 }
 0x2a3   :  { %1067 = vmatprep.mubr.msk.bf16.mxu1 %vm278_vm1, %v539_v28 }
 0x2a4   :  { %733 = vmatmul.mubr.bf16.vlgmr.msra.gmra.mrb[4].mxu1 %v538_v27 }
 0x377   :  { %v734_v36 = vpop.f32.mrb[4].mxu1 }
 0x378   :  { %v735_v37 = vadd.f32 %v734_v36, %v570_v34  ;;  %v736_v38 = vpop.f32.mrb[5].mxu1 }
 0x379   :  { %v737_v39 = vadd.f32 %v736_v38, %v574_v35  ;;  %v738_v40 = vpop.f32.mrb[6].mxu1 }
 0x37a   :  { %v739_v41 = vadd.f32 %v738_v40, %v570_v34  ;;  %v740_v42 = vpop.f32.mrb[7].mxu1  ;;  %v743_v44 = vmax.f32 %v735_v37, 0.0 }
 0x37b   :  { %v741_v43 = vadd.f32 %v740_v42, %v574_v35  ;;  %v744_v46 = vmax.f32 %v737_v39, 0.0 }
 0x37c   :  { %v745_v45 = vmax.f32 %v739_v41, 0.0 }
 0x37d   :  { %v746_v47 = vmax.f32 %v741_v43, 0.0 }
 0x37e   :  { %v747_v48 = vpack.c.bf16 %v745_v45, %v743_v44 }
 0x37f   :  { %v748_v49 = vpack.c.bf16 %v746_v47, %v744_v46 }
 0x381   :  { %1093 = vmatprep.mubr.msk.bf16.mxu0 %vm278_vm1, %v748_v49 }
 0x382   :  { %942 = vmatmul.mubr.bf16.vlgmr.msra.gmra.mrb[8].mxu0 %v747_v48 }
 0x455   :  { %v943_v57 = vpop.f32.mrb[8].mxu0 }
 0x456   :  { %v944_v59 = vadd.f32 %v943_v57, %v779_v52  ;;  %v945_v60 = vpop.f32.mrb[9].mxu0 }
 0x457   :  { %v946_v61 = vadd.f32 %v945_v60, %v783_v53  ;;  %v947_v62 = vpop.f32.mrb[10].mxu0 }
 0x458   :  { %952 = vst [vmem:[%s1667_s7] sm:$0xff] %v944_v59  ;;  %v969_v63 = vadd.f32 %v962_v55, %v944_v59  ;;  %v948_v0 = vadd.f32 %v947_v62, %v779_v52  ;;  %v949_v1 = vpop.f32.mrb[11].mxu0 }
 0x459   :  { %953 = vst [vmem:[%s1667_s7 + $0x8] sm:$0xff] %v946_v61  ;;  %v970_v2 = vadd.f32 %v966_v58, %v946_v61  ;;  %v950_v54 = vadd.f32 %v949_v1, %v783_v53 }
 0x45a   :  { %973 = vst [vmem:[%s1668_s8] sm:$0xff] %v969_v63  ;;  %954 = vst [vmem:[%s1667_s7 + $0x10] sm:$0xff] %v948_v0  ;;  %v971_v56 = vadd.f32 %v962_v55, %v948_v0 }
 0x45b   :  { %974 = vst [vmem:[%s1668_s8 + $0x8] sm:$0xff] %v970_v2  ;;  %955 = vst [vmem:[%s1667_s7 + $0x18] sm:$0xff] %v950_v54  ;;  %v972_v3 = vadd.f32 %v966_v58, %v950_v54 }
 0x45c   :  { %975 = vst [vmem:[%s1668_s8 + $0x10] sm:$0xff] %v971_v56 }
 0x45d   :  { %976 = vst [vmem:[%s1668_s8 + $0x18] sm:$0xff] %v972_v3 }

</bundles_post_ra>
